<compile_context>
chip_gen: v7x
topology: tpu7x:2x2x1
jax: 0.10.0
libtpu: 0.0.40
codegen_flags: <defaults>
</compile_context>

<pallas_src>
import jax
import jax.numpy as jnp
from jax import lax
from jax.experimental import pallas as pl
from jax.experimental.pallas import tpu as pltpu


def _round_up(v, m):
    return ((v + m - 1) // m) * m


def _make_value_net_kernel(chunk):
    """Build the kernel for a given static lane-chunk size (chunk divides tb)."""

    def kernel(x_ref, w1_ref, b1_ref, w2_ref, b2_ref, o_ref):
        # x:  (S, tb)  batch on lanes          w1: (H, S) == torch fc1.weight
        # b1: (H, 1)   w2: (1, H)              b2: SMEM (1,) scalar
        # o:  (1, tb)  lane-dense output row
        w1 = w1_ref[...]
        b1 = b1_ref[...]
        w2 = w2_ref[...]
        b2 = b2_ref[0]
        tb = x_ref.shape[-1]
        n_chunks = tb // chunk  # wrapper guarantees chunk divides tb

        def one_chunk(j):
            xs = x_ref[:, pl.ds(j, chunk)]                                 # (S, c)
            # Layer 1 on the MXU (f32 accumulation); bias + ReLU on the VPU,
            # all lane-dense because batch sits on the lane axis.
            h = jnp.dot(w1, xs, preferred_element_type=jnp.float32) + b1   # (H, c)
            h = jnp.maximum(h, 0.0)
            # Layer 2: plain (1, H) @ (H, c) MXU matmul -> lane-dense row.
            o = jnp.dot(w2, h, preferred_element_type=jnp.float32) + b2    # (1, c)
            o_ref[:, pl.ds(j, chunk)] = o.astype(o_ref.dtype)

        if n_chunks == 1:
            one_chunk(0)
        else:
            def body(c, carry):
                one_chunk(pl.multiple_of(c * chunk, chunk))
                return carry

            # Chunking keeps the (H, chunk) intermediate in vregs (no VMEM h);
            # partial unroll gives the scheduler visibility without code blowup.
            lax.fori_loop(0, n_chunks, body, 0, unroll=min(n_chunks, 8))

    return kernel


def value_net_forward(
    x, w1, b1, w2, b2, *,
    x_is_transposed=False,
    target_bytes_per_step=2 << 20,     # ~2 MiB of x per grid step (see header)
    chunk=512,
    vmem_limit_bytes=32 * 1024 * 1024,
):
    """Fused ValueNet forward:  relu(fc1(x)) -> fc2.

    Kernel-ready layouts (torch-native, no per-call weight transposes):
      x : (B, S) states -- or (S, B) with x_is_transposed=True (preferred when
                           the caller controls the rollout buffer layout: it
                           skips the wrapper-side transpose below)
      w1: (H, S) == fc1.weight      b1: (H, 1) == fc1.bias[:, None]
      w2: (1, H) == fc2.weight      b2: (1,)   == fc2.bias
    Returns (B, 1) in x.dtype.
    """
    if x_is_transposed:
        x_t = x
        S, B = x.shape
    else:
        # TODO(synk): store PPO rollout states batch-last (S, B) and pass
        # x_is_transposed=True to avoid this extra HBM-bound transpose op.
        B, S = x.shape
        x_t = x.T
    H = w1.shape[0]
    itemsize = x_t.dtype.itemsize
    bytes_per_row = S * itemsize

    chunk = max(128, (int(chunk) // 128) * 128)  # lane-aligned chunk

    if B <= max(1024, chunk):
        # Single full-extent tile; one grid step, no inner chunk loop.
        tb, num_tiles, chunk_eff = B, 1, B
    else:
        # Rows per step from the bytes-per-step target ...
        rows_target = max(chunk, int(target_bytes_per_step) // bytes_per_row)
        # ... but keep >= 2 tiles so the "parallel" axis can shard across the
        # two TensorCores on v7x (a ~0.35 us extra step elsewhere) ...
        rows_cap = _round_up(pl.cdiv(B, 2), chunk)
        # ... and stay well inside the scoped VMEM limit (double-buffered x
        # block + double-buffered output row).
        vmem_cap = max(
            chunk,
            ((vmem_limit_bytes // 2) // (2 * (S + 1) * itemsize)) // chunk * chunk,
        )
        tb = max(chunk, min(_round_up(min(rows_target, B), chunk),
                            rows_cap, vmem_cap))
        num_tiles = pl.cdiv(B, tb)
        if num_tiles > 1 and num_tiles % 2:
            # Best-effort: even tile count balances the two v7x TensorCores.
            tb = max(chunk, _round_up(pl.cdiv(B, num_tiles + 1), chunk))
            num_tiles = pl.cdiv(B, tb)
        chunk_eff = chunk

    padded_b = num_tiles * tb

    flops = 2 * B * S * H + 2 * B * H
    bytes_accessed = itemsize * (B * S + H * S + 2 * H + padded_b) + 4

    out_row = pl.pallas_call(
        _make_value_net_kernel(chunk_eff),
        out_shape=jax.ShapeDtypeStruct((1, padded_b), x_t.dtype),
        grid=(num_tiles,),
        in_specs=[
            pl.BlockSpec((S, tb), lambda i: (0, i)),            # x: batch-on-lanes tile
            pl.BlockSpec((H, S), lambda i: (0, 0)),             # w1: resident
            pl.BlockSpec((H, 1), lambda i: (0, 0)),             # b1: resident
            pl.BlockSpec((1, H), lambda i: (0, 0)),             # w2: resident
            pl.BlockSpec(memory_space=pltpu.MemorySpace.SMEM),  # b2: SMEM scalar
        ],
        out_specs=pl.BlockSpec((1, tb), lambda i: (0, i)),      # lane-dense out row
        compiler_params=pltpu.CompilerParams(
            dimension_semantics=("parallel",),                  # megacore on v7x
            vmem_limit_bytes=vmem_limit_bytes,
        ),
        cost_estimate=pl.CostEstimate(
            flops=flops, transcendentals=0, bytes_accessed=bytes_accessed),
    )(x_t, w1, b1, w2, b2)

    # Columns [B:padded_b) of out_row are padding garbage (undefined tail of the
    # last x block) -- never consume them.  Skip the slice when there is no pad.
    row = out_row if padded_b == B else out_row[:, :B]
    return row.reshape(B, 1)


def init_value_net_params(key, state_dim, hidden_dim):
    """torch.nn.Linear-style init (U(-1/sqrt(fan_in), +1/sqrt(fan_in))), stored
    in kernel-ready layouts -- which for this kernel ARE torch's native ones:
      w1: (H, S) == fc1.weight      b1: (H, 1) == fc1.bias[:, None]
      w2: (1, H) == fc2.weight      b2: (1,)   == fc2.bias
    """
    k1, k2, k3, k4 = jax.random.split(key, 4)
    lim1 = 1.0 / jnp.sqrt(jnp.float32(state_dim))
    lim2 = 1.0 / jnp.sqrt(jnp.float32(hidden_dim))
    w1 = jax.random.uniform(k1, (hidden_dim, state_dim), jnp.float32, -lim1, lim1)
    b1 = jax.random.uniform(k2, (hidden_dim, 1), jnp.float32, -lim1, lim1)
    w2 = jax.random.uniform(k3, (1, hidden_dim), jnp.float32, -lim2, lim2)
    b2 = jax.random.uniform(k4, (1,), jnp.float32, -lim2, lim2)
    return w1, b1, w2, b2


if __name__ == "__main__":
    key = jax.random.PRNGKey(0)
    k_x, k_p = jax.random.split(key)

    state_dim, hidden_dim = 16, 32
    w1, b1, w2, b2 = init_value_net_params(k_p, state_dim, hidden_dim)

    def reference(xx):
        # Same math as the PyTorch forward, torch-native weight layouts.
        return jnp.maximum(xx @ w1.T + b1[:, 0], 0.0) @ w2.T + b2

    # 1) small batch, single full-extent tile.
    x_small = jax.random.normal(k_x, (8, state_dim), jnp.float32)
    out_small = jax.block_until_ready(value_net_forward(x_small, w1, b1, w2, b2))
    assert out_small.shape == (8, 1)
    assert jnp.allclose(out_small, reference(x_small), atol=1e-5, rtol=1e-5)

    # 2) medium batch, still a single tile.
    x_med = jax.random.normal(k_x, (512, state_dim), jnp.float32)
    out_med = jax.block_until_ready(value_net_forward(x_med, w1, b1, w2, b2))
    assert out_med.shape == (512, 1)
    assert jnp.allclose(out_med, reference(x_med), atol=1e-5, rtol=1e-5)

    # 3) multi-tile pipelined path with a ragged last tile (exercises the inner
    #    chunk loop and the padded-output slice); small bytes-per-step target
    #    only to force multiple tiles at this small demo batch.
    x_big = jax.random.normal(k_x, (2560, state_dim), jnp.float32)
    out_big = jax.block_until_ready(
        value_net_forward(x_big, w1, b1, w2, b2, target_bytes_per_step=64 << 10))
    assert out_big.shape == (2560, 1)
    assert jnp.allclose(out_big, reference(x_big), atol=1e-5, rtol=1e-5)

    # 4) caller-provided transposed (S, B) states: no wrapper transpose at all.
    out_t = jax.block_until_ready(
        value_net_forward(x_med.T, w1, b1, w2, b2, x_is_transposed=True))
    assert jnp.allclose(out_t, reference(x_med), atol=1e-5, rtol=1e-5)

    print("KERNEL_OK")
</pallas_src>

<mosaic_0001>
module attributes {stable_mosaic.version = 11 : i64} {
  func.func @kernel(%arg0: i32, %arg1: memref<16x8xf32, #tpu.memory_space<vmem>>, %arg2: memref<32x16xf32, #tpu.memory_space<vmem>>, %arg3: memref<32x1xf32, #tpu.memory_space<vmem>>, %arg4: memref<1x32xf32, #tpu.memory_space<vmem>>, %arg5: memref<1xf32, #tpu.memory_space<smem>>, %arg6: memref<1x8xf32, #tpu.memory_space<vmem>>) attributes {dimension_semantics = [#tpu.dimension_semantics<parallel>], iteration_bounds = array<i64: 1>, scalar_prefetch = 0 : i64, scratch_operands = 0 : i64, tpu.core_type = #tpu.core_type<tc>, window_params = [{transform_indices = @transform_0, window_bounds = array<i64: 16, 8>}, {pipeline_mode = #tpu.pipeline_mode<synchronous>, transform_indices = @transform_1, window_bounds = array<i64: 32, 16>}, {pipeline_mode = #tpu.pipeline_mode<synchronous>, transform_indices = @transform_2, window_bounds = array<i64: 32, 1>}, {pipeline_mode = #tpu.pipeline_mode<synchronous>, transform_indices = @transform_3, window_bounds = array<i64: 1, 32>}, {transform_indices = @transform_4, window_bounds = array<i64: 1>}, {transform_indices = @transform_5, window_bounds = array<i64: 1, 8>}]} {
    %c0 = arith.constant 0 : index
    %c0_0 = arith.constant 0 : index
    %0 = vector.load %arg2[%c0, %c0_0] : memref<32x16xf32, #tpu.memory_space<vmem>>, vector<32x16xf32>
    %c0_1 = arith.constant 0 : index
    %c0_2 = arith.constant 0 : index
    %1 = vector.load %arg3[%c0_1, %c0_2] : memref<32x1xf32, #tpu.memory_space<vmem>>, vector<32x1xf32>
    %c0_3 = arith.constant 0 : index
    %c0_4 = arith.constant 0 : index
    %2 = vector.load %arg4[%c0_3, %c0_4] : memref<1x32xf32, #tpu.memory_space<vmem>>, vector<1x32xf32>
    %c0_5 = arith.constant 0 : index
    %3 = memref.load %arg5[%c0_5] : memref<1xf32, #tpu.memory_space<smem>>
    %c0_6 = arith.constant 0 : index
    %c0_7 = arith.constant 0 : index
    %4 = vector.load %arg1[%c0_6, %c0_7] : memref<16x8xf32, #tpu.memory_space<vmem>>, vector<16x8xf32>
    %cst = arith.constant dense<0.000000e+00> : vector<32x8xf32>
    %5 = tpu.matmul %0, %4, %cst {dimension_numbers = #tpu.dot_dimension_numbers<[1], [0], [0], [1], [0, 0, 1, 1], [], []>} : vector<32x16xf32>, vector<16x8xf32>, vector<32x8xf32> -> vector<32x8xf32>
    %6 = vector.broadcast %1 : vector<32x1xf32> to vector<32x8xf32>
    %7 = arith.addf %5, %6 : vector<32x8xf32>
    %cst_8 = arith.constant 0.000000e+00 : f32
    %8 = vector.broadcast %cst_8 : f32 to vector<32x8xf32>
    %9 = arith.maximumf %7, %8 : vector<32x8xf32>
    %cst_9 = arith.constant dense<0.000000e+00> : vector<1x8xf32>
    %10 = tpu.matmul %2, %9, %cst_9 {dimension_numbers = #tpu.dot_dimension_numbers<[1], [0], [0], [1], [0, 0, 1, 1], [], []>} : vector<1x32xf32>, vector<32x8xf32>, vector<1x8xf32> -> vector<1x8xf32>
    %11 = vector.broadcast %3 : f32 to vector<1x8xf32>
    %12 = arith.addf %10, %11 : vector<1x8xf32>
    %c0_10 = arith.constant 0 : index
    %c0_11 = arith.constant 0 : index
    %13 = vector.load %arg6[%c0_10, %c0_11] : memref<1x8xf32, #tpu.memory_space<vmem>>, vector<1x8xf32>
    tpu.vector_store %arg6[%c0_10, %c0_11], %12 {strides = array<i32>} : memref<1x8xf32, #tpu.memory_space<vmem>>, vector<1x8xf32>,
    return
  }
  func.func @transform_0(%arg0: i32) -> (i32, i32) {
    %c0_i32 = arith.constant 0 : i32
    %c0_i32_0 = arith.constant 0 : i32
    return %c0_i32, %arg0 : i32, i32
  }
  func.func @transform_1(%arg0: i32) -> (i32, i32) {
    %c0_i32 = arith.constant 0 : i32
    %c0_i32_0 = arith.constant 0 : i32
    %c0_i32_1 = arith.constant 0 : i32
    return %c0_i32, %c0_i32_0 : i32, i32
  }
  func.func @transform_2(%arg0: i32) -> (i32, i32) {
    %c0_i32 = arith.constant 0 : i32
    %c0_i32_0 = arith.constant 0 : i32
    %c0_i32_1 = arith.constant 0 : i32
    return %c0_i32, %c0_i32_0 : i32, i32
  }
  func.func @transform_3(%arg0: i32) -> (i32, i32) {
    %c0_i32 = arith.constant 0 : i32
    %c0_i32_0 = arith.constant 0 : i32
    %c0_i32_1 = arith.constant 0 : i32
    return %c0_i32, %c0_i32_0 : i32, i32
  }
  func.func @transform_4(%arg0: i32) -> i32 {
    %c0_i32 = arith.constant 0 : i32
    %c0_i32_0 = arith.constant 0 : i32
    return %c0_i32 : i32
  }
  func.func @transform_5(%arg0: i32) -> (i32, i32) {
    %c0_i32 = arith.constant 0 : i32
    %c0_i32_0 = arith.constant 0 : i32
    return %c0_i32, %arg0 : i32, i32
  }
}

</mosaic_0001>

<bundles_post_ra>
// kernel: tpu_custom_call.1
= control target key start
LH: loop header
LB: loop body
LE: loop exit
PB: predicated region body
PF: predicated region fallthrough
CT: control target
= control target key end

     0   :  { %vm54_vm0 = vcmask 130048   ;;  %v325_v4 = vmov 0   ;;  %s412_s0 = inlined_call_operand.vmem [shape: f32[16,8], index: 0, kind: input, shape index: {}]   ;;  %s413_s1 = inlined_call_operand.vmem [shape: f32[32,16], index: 1, kind: input, shape index: {}]   ;;  %s414_s2 = inlined_call_operand.vmem [shape: f32[32,1], index: 2, kind: input, shape index: {}]   ;;  %s415_s3 = inlined_call_operand.vmem [shape: f32[1,32], index: 3, kind: input, shape index: {}]   ;;  %s416_s4 = inlined_call_operand.<no memory space> [shape: f32[1], index: 4, kind: input, shape index: {}]   ;;  %s417_s5 = inlined_call_operand.hbm [shape: f32[1,8], index: 5, kind: output, shape index: {}]  }
   0x1   :  { %v32_v0 = vld [vmem:[%s412_s0] sm:$0xff]  ;;  %v33_v1 = vld [vmem:[%s412_s0 + $0x8] sm:$0xff]  ;;  %299 = vset.pattern.permute.xlu0 %v325_v4  ;;  %300 = vset.pattern.permute.xlu1 %v325_v4  ;;  %v28_v6 = vld [vmem:[%s414_s2 + $0x10] sm:$0xff] }
   0x2   :  { %v22_v2 = vld [vmem:[%s413_s1] sm:$0xff]  ;;  %v284_v3 = vpack.c.bf16 %v33_v1, %v32_v0 }
   0x3   :  { %267 = vmatprep.mubr.msk.f32.mxu0 %vm54_vm0, %v22_v2  ;;  %v26_v5 = vld [vmem:[%s414_s2] sm:$0xff] }
   0x4   :  { %285 = vmatprep.subr.bf16.mxu0 %v284_v3  ;;  %36 = vperm.xlu0 %299, %v26_v5  }
   0x5   :  { %11 = vsyncpa [#allocation4], 0  ;;  %287 = vmatpush3.bf16.msra.mxu0 %v284_v3  ;;  %v23_v7 = vld [vmem:[%s413_s1 + $0x8] sm:$0xff]  ;;  %46 = vperm.xlu1 %300, %v28_v6   ;;  %v24_v9 = vld [vmem:[%s413_s1 + $0x10] sm:$0xff]  ;;  %v326_v12 = vmov 0.0|0.0   ;;  %vm327_vm1 = vmmov 0   ;;  %v156_v33 = vstv %s416_s4 }
   0x6   :  { %v27_v8 = vld [vmem:[%s414_s2 + $0x8] sm:$0xff]  ;;  %v29_v10 = vld [vmem:[%s414_s2 + $0x18] sm:$0xff]  ;;  %288 = vmatprep.subr.bf16.mxu1 %v326_v12  ;;  %v328_v13 = vmov 0.0   ;;  %v30_v32 = vld [vmem:[%s415_s3] sm:$0x1]  ;;  %vm157_vm2 = vcmask 261120  }
   0x7   :  { %v25_v11 = vld [vmem:[%s413_s1 + $0x18] sm:$0xff]  ;;  %281 = vmatprep.mubr.msk.f32.mxu1 %vm327_vm1, %v328_v13  ;;  %s329_s14 = smov [#allocation3]   ;;  %vm231_vm3 = vcmask 57344  }
   0x8   :  { %268 = vmatmul.mubr.msk.f32.vlgmr.msra.gmra.mrb[0].mxu0 %vm54_vm0, %v23_v7  ;;  %41 = vperm.xlu0 %299, %v27_v8   ;;  %s239_s15 = sshll.u32 %s329_s14, 4  ;;  %s240_s15 = int_to_ptr.vmem [resolvable:$true] %s239_s15 }
   0x9   :  { %270 = vmatprep.mubr.msk.f32.mxu0 %vm54_vm0, %v24_v9  ;;  %51 = vperm.xlu1 %300, %v29_v10   ;;  %s301_s16 = scalar_lea.vmem %s240_s15, 16  ;;  %s305_s17 = scalar_lea.vmem %s240_s15, 32 }
   0xa   :  { %p302_p0 = scmp.ne.s32.totalorder %s240_s15, %s301_s16  ;;  %p306_p1 = scmp.lt.s32.totalorder %s240_s15, %s240_s15 }
   0xb   :  { %p307_p2 = scmp.lt.s32.totalorder %s305_s17, %s301_s16 }
   0xc   :  { %271 = vmatmul.mubr.msk.f32.gmra.mrb[2].mxu0 %vm54_vm0, %v25_v11 }
   0xd   :  { %p308_p3 = por %p307_p2, %p306_p1 }
   0xf   :  { %p309_p4 = pnand %p308_p3, %p302_p0 }
  0x83   :  { %v37_v14 = vpop.permute.xlu0 %36 }
  0x84   :  { %v47_v15 = vpop.permute.xlu1 %46 }
  0x87   :  { %v42_v16 = vpop.permute.xlu0 %41 }
  0x88   :  { %v52_v22 = vpop.permute.xlu1 %51 }
  0xdb   :  { %v269_v17 = vpop.f32.mrb[0].mxu0 }
  0xdc   :  { %v139_v18 = vadd.f32 %v269_v17, %v42_v16  ;;  %v133_v19 = vpop.f32.mrb[1].mxu0 }
  0xdd   :  { %v134_v20 = vadd.f32 %v133_v19, %v37_v14 }
  0xde   :  { %v153_v21 = vmax.f32 %v139_v18, 0.0 }
  0xdf   :  { %v152_v23 = vmax.f32 %v134_v20, 0.0  ;;  %v272_v24 = vpop.f32.mrb[2].mxu0 }
  0xe0   :  { %v149_v25 = vadd.f32 %v272_v24, %v52_v22  ;;  %v143_v26 = vpop.f32.mrb[3].mxu0 }
  0xe1   :  { %v144_v27 = vadd.f32 %v143_v26, %v47_v15  ;;  %v289_v28 = vpack.c.bf16 %v153_v21, %v152_v23 }
  0xe2   :  { %v155_v29 = vmax.f32 %v149_v25, 0.0 }
  0xe3   :  { %v154_v30 = vmax.f32 %v144_v27, 0.0  ;;  %290 = vmatpush3.bf16.msra.mxu1 %v289_v28 }
  0xe4   :  { %291 = vmatprep.subr.bf16.mxu1 %v326_v12 }
  0xe5   :  { %v292_v31 = vpack.c.bf16 %v155_v29, %v154_v30 }
  0xe7   :  { %293 = vmatpush3.bf16.msra.mxu1 %v292_v31 }
  0xea   :  { %282 = vmatmul.mubr.msk.f32.vlgmr.msra.gmra.mrb[0].mxu1 %vm157_vm2, %v30_v32 }
 0x1bd   :  { %v227_v34 = vpop.f32.mrb[0].mxu1 }
 0x1be   :  { %v228_v35 = vadd.f32 %v227_v34, %v156_v33  ;;  %v283_v36 = vpop.f32.mrb[1].mxu1 }
 0x1c0   :  { %232 = vst.msk [vmem:[#allocation3] sm:$0x1] %vm231_vm3, %v228_v35 }
 0x1c1   :  { %312 = shalt.err (!%p309_p4)
}
 0x1c2   :  { %s313_s4 = scalar_lea.hbm %s417_s5, 16 }
 0x1c3   :  { %p314_p5 = scmp.ne.s32.totalorder %s417_s5, %s313_s4  ;;  %p317_p6 = scmp.lt.u32.totalorder %s313_s4, %s417_s5 }
 0x1c5   :  { %p319_p7 = pnand %p317_p6, %p314_p5 }
 0x1c7   :  { %322 = shalt.err (!%p319_p7)
}
 0x1c8   :  { %242 = dma.vmem_to_hbm [thread:$0]  %s240_s15, 16, %s417_s5, [#allocation4]  }
 0x1c9   :  { %323 = dma.done.wait [#allocation4], 16  }
 0x1ca   :  { %324 = vsyncadd [#allocation4], 4294967280 }
 0x1cb   :  { %246 = vsyncpa [#allocation4], 1 }

</bundles_post_ra>
